<compile_context>
chip_gen: v7x
topology: tpu7x:2x2x1
jax: 0.10.0
libtpu: 0.0.40
codegen_flags: <defaults>
</compile_context>

<pallas_src>
import jax
import jax.numpy as jnp
from jax.experimental import pallas as pl
from jax.experimental.pallas import tpu as pltpu

_VMEM_BUDGET = 20 * 1024 * 1024   # accounted live bytes per grid step (safe on v7x's 64 MiB/TC)
_VMEM_LIMIT = 32 * 1024 * 1024    # scoped-VMEM limit passed to Mosaic (safe on v5e/v6e/v7x)


# ---------------------------------------------------------------------------
# Fast path: L % 128 == 0  ->  no wrapper HBM relayouts.
# ---------------------------------------------------------------------------
def _nconv_batched_kernel(at_ref, x_ref, o_ref):
    # at_ref: (W, V)  loop-invariant (constant block index -> fetched once)
    # x_ref:  (TB, V, TL);  o_ref: (TB, W, TL); TL multiple of 128 (lane-dense)
    tb = x_ref.shape[0]
    at_b = jnp.broadcast_to(at_ref[...], (tb, at_ref.shape[0], at_ref.shape[1]))
    o_ref[...] = jnp.einsum(
        "bwv,bvl->bwl", at_b, x_ref[...],
        preferred_element_type=jnp.float32,
    ).astype(o_ref.dtype)


def _pick_tiles_batched(NC, V, W, L, itemsize, budget=_VMEM_BUDGET):
    # TL: largest multiple of 128 that divides L (capped to keep blocks sane).
    tl = 128
    for cand in range(min(L, 2048) // 128 * 128, 127, -128):
        if L % cand == 0:
            tl = cand
            break
    # Per-batch-element live bytes: double-buffered x + out tiles plus the
    # f32 matmul temp produced before the .astype.
    per_b = 2 * (V + W) * tl * itemsize + W * tl * 4
    fixed = 2 * W * V * itemsize                       # A^T buffers
    tb = max(1, (budget - fixed) // per_b)
    if NC >= 2:
        tb = min(tb, max(1, NC // 2))   # >= 2 batch steps -> both v7x cores busy
    tb = min(tb, NC)
    while NC % tb:                      # keep the grid exact (no ragged blocks)
        tb -= 1
    return tb, tl


def _nconv_lane_dense(x, A):
    N, C, V, L = x.shape
    W = A.shape[1]
    NC = N * C
    x3 = x.reshape(NC, V, L)            # free: contiguous view, no HBM pass
    a_t = A.T                           # tiny one-time (V,W) -> (W,V)

    itemsize = jnp.dtype(x.dtype).itemsize
    tb, tl = _pick_tiles_batched(NC, V, W, L, itemsize)
    grid = (NC // tb, L // tl)

    cost = pl.CostEstimate(
        flops=2 * NC * L * V * W,
        transcendentals=0,
        bytes_accessed=(NC * L * (V + W) + V * W) * itemsize,
    )

    out3 = pl.pallas_call(
        _nconv_batched_kernel,
        out_shape=jax.ShapeDtypeStruct((NC, W, L), x.dtype),
        grid_spec=pltpu.PrefetchScalarGridSpec(
            num_scalar_prefetch=0,
            grid=grid,
            in_specs=[
                pl.BlockSpec((W, V), lambda b, l: (0, 0)),        # A^T, fetched once
                pl.BlockSpec((tb, V, tl), lambda b, l: (b, 0, l)),
            ],
            out_specs=pl.BlockSpec((tb, W, tl), lambda b, l: (b, 0, l)),
        ),
        compiler_params=pltpu.CompilerParams(
            dimension_semantics=("parallel", "parallel"),
            vmem_limit_bytes=_VMEM_LIMIT,
        ),
        cost_estimate=cost,
    )(a_t, x3)
    return out3.reshape(N, C, W, L)     # free: contiguous view


# ---------------------------------------------------------------------------
# General path: fused M = N*C*L lane dimension (handles any L).
# ---------------------------------------------------------------------------
def _nconv_fused_kernel(at_ref, x_ref, o_ref):
    # at_ref: (W, V) loop-invariant; x_ref: (V, TM); o_ref: (W, TM)
    o_ref[...] = jnp.dot(
        at_ref[...], x_ref[...], preferred_element_type=jnp.float32
    ).astype(o_ref.dtype)


def _pick_tile_fused(M, V, W, itemsize, budget=_VMEM_BUDGET):
    # Live VMEM per step: double-buffered x tile (2*V*TM) + out tile (2*W*TM),
    # the f32 matmul temp before .astype (4*W*TM), and A^T buffers.
    fixed = 2 * W * V * itemsize
    per_col = 2 * (V + W) * itemsize + 4 * W
    tm = max(128, ((budget - fixed) // per_col) // 128 * 128)
    if M >= 256:
        # Guarantee >= 2 grid steps so a 2-core part (v7x) can split the axis.
        tm = min(tm, pl.cdiv(pl.cdiv(M, 2), 128) * 128)
    tm = min(tm, pl.cdiv(M, 128) * 128)               # don't over-allocate
    return tm


def _nconv_fused(x, A):
    N, C, V, L = x.shape
    W = A.shape[1]
    M = N * C * L

    # TODO(synk): these two relayouts (input transpose here, inverse transpose
    # below) are full HBM passes; they disappear if the surrounding model keeps
    # activations in (V, N*C*L) layout or the consumer fuses the inverse.
    x_mat = jnp.transpose(x, (2, 0, 1, 3)).reshape(V, M)
    a_t = A.T

    itemsize = jnp.dtype(x.dtype).itemsize
    tm = _pick_tile_fused(M, V, W, itemsize)
    m_pad = pl.cdiv(M, tm) * tm
    if m_pad != M:
        x_mat = jnp.pad(x_mat, ((0, 0), (0, m_pad - M)))

    cost = pl.CostEstimate(
        flops=2 * M * V * W,
        transcendentals=0,
        bytes_accessed=(M * (V + W) + V * W) * itemsize,
    )

    out_mat = pl.pallas_call(
        _nconv_fused_kernel,
        out_shape=jax.ShapeDtypeStruct((W, m_pad), x.dtype),
        grid_spec=pltpu.PrefetchScalarGridSpec(
            num_scalar_prefetch=0,
            grid=(m_pad // tm,),
            in_specs=[
                pl.BlockSpec((W, V), lambda i: (0, 0)),     # A^T, fetched once
                pl.BlockSpec((V, tm), lambda i: (0, i)),    # fused (n,c,l) columns
            ],
            out_specs=pl.BlockSpec((W, tm), lambda i: (0, i)),
        ),
        compiler_params=pltpu.CompilerParams(
            dimension_semantics=("parallel",),
            vmem_limit_bytes=_VMEM_LIMIT,
        ),
        cost_estimate=cost,
    )(a_t, x_mat)

    # (W, m_pad) -> (W, M) -> (W, N, C, L) -> (N, C, W, L)
    return out_mat[:, :M].reshape(W, N, C, L).transpose(1, 2, 0, 3)


def nconv(x, A):
    """x: (N, C, V, L), A: (V, W) -> (N, C, W, L). Matches torch.einsum('ncvl,vw->ncwl')."""
    N, C, V, L = x.shape
    V2, W = A.shape
    assert V == V2, "A first dim must match node dim V of x"
    if L % 128 == 0:
        return _nconv_lane_dense(x, A)   # no wrapper HBM relayouts
    return _nconv_fused(x, A)


if __name__ == "__main__":
    key = jax.random.PRNGKey(0)
    kx, ka, kx2 = jax.random.split(key, 3)

    # General path (small, non-128-multiple L -> fused-M layout).
    N, C, V, L = 2, 4, 16, 8
    W = V
    x = jax.random.normal(kx, (N, C, V, L), dtype=jnp.float32)
    A = jax.random.normal(ka, (V, W), dtype=jnp.float32)

    out = jax.block_until_ready(nconv(x, A))
    ref = jnp.einsum("ncvl,vw->ncwl", x, A)
    assert out.shape == (N, C, W, L)
    assert jnp.allclose(out, ref, atol=2e-3, rtol=2e-3)

    # Lane-dense fast path (L % 128 == 0 -> zero wrapper HBM relayouts).
    L2 = 128
    x2 = jax.random.normal(kx2, (N, C, V, L2), dtype=jnp.float32)
    out2 = jax.block_until_ready(nconv(x2, A))
    ref2 = jnp.einsum("ncvl,vw->ncwl", x2, A)
    assert out2.shape == (N, C, W, L2)
    assert jnp.allclose(out2, ref2, atol=2e-3, rtol=2e-3)

    print("KERNEL_OK")
</pallas_src>

<mosaic_0001>
module attributes {stable_mosaic.version = 11 : i64} {
  func.func @_nconv_fused_kernel(%arg0: i32, %arg1: memref<16x16xf32, #tpu.memory_space<vmem>>, %arg2: memref<16x128xf32, #tpu.memory_space<vmem>>, %arg3: memref<16x128xf32, #tpu.memory_space<vmem>>) attributes {dimension_semantics = [#tpu.dimension_semantics<parallel>], iteration_bounds = array<i64: 1>, scalar_prefetch = 0 : i64, scratch_operands = 0 : i64, tpu.core_type = #tpu.core_type<tc>, window_params = [{pipeline_mode = #tpu.pipeline_mode<synchronous>, transform_indices = @transform_0, window_bounds = array<i64: 16, 16>}, {transform_indices = @transform_1, window_bounds = array<i64: 16, 128>}, {transform_indices = @transform_2, window_bounds = array<i64: 16, 128>}]} {
    %c0 = arith.constant 0 : index
    %c0_0 = arith.constant 0 : index
    %0 = vector.load %arg1[%c0, %c0_0] : memref<16x16xf32, #tpu.memory_space<vmem>>, vector<16x16xf32>
    %c0_1 = arith.constant 0 : index
    %c0_2 = arith.constant 0 : index
    %1 = vector.load %arg2[%c0_1, %c0_2] : memref<16x128xf32, #tpu.memory_space<vmem>>, vector<16x128xf32>
    %cst = arith.constant dense<0.000000e+00> : vector<16x128xf32>
    %2 = tpu.matmul %0, %1, %cst {dimension_numbers = #tpu.dot_dimension_numbers<[1], [0], [0], [1], [0, 0, 1, 1], [], []>} : vector<16x16xf32>, vector<16x128xf32>, vector<16x128xf32> -> vector<16x128xf32>
    %c0_3 = arith.constant 0 : index
    %c0_4 = arith.constant 0 : index
    %3 = vector.load %arg3[%c0_3, %c0_4] : memref<16x128xf32, #tpu.memory_space<vmem>>, vector<16x128xf32>
    tpu.vector_store %arg3[%c0_3, %c0_4], %2 {strides = array<i32>} : memref<16x128xf32, #tpu.memory_space<vmem>>, vector<16x128xf32>,
    return
  }
  func.func @transform_0(%arg0: i32) -> (i32, i32) {
    %c0_i32 = arith.constant 0 : i32
    %c0_i32_0 = arith.constant 0 : i32
    %c0_i32_1 = arith.constant 0 : i32
    return %c0_i32, %c0_i32_0 : i32, i32
  }
  func.func @transform_1(%arg0: i32) -> (i32, i32) {
    %c0_i32 = arith.constant 0 : i32
    %c0_i32_0 = arith.constant 0 : i32
    return %c0_i32, %arg0 : i32, i32
  }
  func.func @transform_2(%arg0: i32) -> (i32, i32) {
    %c0_i32 = arith.constant 0 : i32
    %c0_i32_0 = arith.constant 0 : i32
    return %c0_i32, %arg0 : i32, i32
  }
}

</mosaic_0001>

<bundles_post_ra>
// kernel: tpu_custom_call.1
= control target key start
LH: loop header
LB: loop body
LE: loop exit
PB: predicated region body
PF: predicated region fallthrough
CT: control target
= control target key end

     0   :  { %7 = vsyncpa [#allocation3], 0  ;;  %s305_s0 = inlined_call_operand.hbm [shape: f32[16,16], index: 0, kind: input, shape index: {}]   ;;  %s306_s1 = inlined_call_operand.hbm [shape: f32[16,128], index: 1, kind: input, shape index: {}]   ;;  %s307_s2 = inlined_call_operand.hbm [shape: f32[16,128], index: 2, kind: output, shape index: {}]  }
   0x1   :  { %8 = vsyncpa [#allocation6], 0 }
   0x2   :  { %9 = vsyncpa [#allocation4], 0  ;;  %s240_s9 = smov [#allocation2]   ;;  %s168_s13 = scalar_lea.hbm %s305_s0, 256 }
   0x3   :  { %s15_s10 = sshll.u32 %s240_s9, 4  ;;  %p169_p0 = scmp.ne.s32.totalorder %s305_s0, %s168_s13  ;;  %s16_s10 = int_to_ptr.vmem [resolvable:$true] %s15_s10 }
   0x4   :  { %p172_p1 = scmp.lt.u32.totalorder %s168_s13, %s305_s0 }
   0x6   :  { %p174_p2 = pnand %p172_p1, %p169_p0 }
   0x8   :  { %177 = shalt.err (!%p174_p2)
}
   0x9   :  { %s178_s18 = scalar_lea.vmem %s16_s10, 256  ;;  %p183_p4 = scmp.lt.s32.totalorder %s16_s10, %s16_s10 }
   0xa   :  { %p179_p3 = scmp.ne.s32.totalorder %s16_s10, %s178_s18  ;;  %p184_p5 = scmp.lt.s32.totalorder %s178_s18, %s178_s18 }
   0xc   :  { %p185_p6 = por %p184_p5, %p183_p4 }
   0xe   :  { %p186_p7 = pnand %p185_p6, %p179_p3 }
  0x10   :  { %189 = shalt.err (!%p186_p7)
}
  0x11   :  { %s241_s19 = smov 128   ;;  %s242_s20 = smov 8  }
  0x12   :  { %21 = dma.hbm_to_vmem [thread:$0]  %s305_s0, 256, %s16_s10, [#allocation3], %s241_s19, %s241_s19, %s242_s20  }
  0x13   :  { %s243_s23 = smov [#allocation5]   ;;  %s190_s27 = scalar_lea.hbm %s306_s1, 256 }
  0x14   :  { %s27_s24 = sshll.u32 %s243_s23, 4  ;;  %p191_p8 = scmp.ne.s32.totalorder %s306_s1, %s190_s27  ;;  %s28_s24 = int_to_ptr.vmem [resolvable:$true] %s27_s24 }
  0x15   :  { %p194_p9 = scmp.lt.u32.totalorder %s190_s27, %s306_s1 }
  0x17   :  { %p196_p10 = pnand %p194_p9, %p191_p8 }
  0x19   :  { %199 = shalt.err (!%p196_p10)
}
  0x1a   :  { %s200_s4 = scalar_lea.vmem %s28_s24, 256  ;;  %p205_p12 = scmp.lt.s32.totalorder %s28_s24, %s28_s24 }
  0x1b   :  { %p201_p11 = scmp.ne.s32.totalorder %s28_s24, %s200_s4  ;;  %p206_p13 = scmp.lt.s32.totalorder %s200_s4, %s200_s4 }
  0x1d   :  { %p207_p0 = por %p206_p13, %p205_p12 }
  0x1f   :  { %p208_p1 = pnand %p207_p0, %p201_p11 }
  0x21   :  { %211 = shalt.err (!%p208_p1)
}
  0x22   :  { %33 = dma.hbm_to_vmem [thread:$0]  %s306_s1, 256, %s28_s24, [#allocation6], %s241_s19, %s241_s19, %s242_s20  }
  0x23   :  { %234 = dma.done.wait [#allocation3], 256  }
  0x24   :  { %235 = vsyncadd [#allocation3], 4294967040 }
  0x25   :  { %236 = dma.done.wait [#allocation6], 256  }
  0x26   :  { %237 = vsyncadd [#allocation6], 4294967040  ;;  %vm44_vm0 = vcmask 130048   ;;  %v42_v0 = vld [vmem:[#allocation5] sm:$0xff]  ;;  %v43_v1 = vld [vmem:[#allocation5 + $0x8] sm:$0xff]  ;;  %s244_s6 = smov [#allocation7]  }
  0x27   :  { %v40_v2 = vld [vmem:[#allocation2] sm:$0xff]  ;;  %v159_v3 = vpack.c.bf16 %v43_v1, %v42_v0  ;;  %v41_v4 = vld [vmem:[#allocation2 + $0x8] sm:$0xff]  ;;  %s133_s7 = sshll.u32 %s244_s6, 4  ;;  %s134_s7 = int_to_ptr.vmem [resolvable:$true] %s133_s7 }
  0x28   :  { %156 = vmatprep.mubr.msk.f32.mxu0 %vm44_vm0, %v40_v2  ;;  %s212_s1 = scalar_lea.vmem %s134_s7, 256  ;;  %p217_p3 = scmp.lt.s32.totalorder %s134_s7, %s134_s7 }
  0x29   :  { %160 = vmatprep.subr.bf16.mxu0 %v159_v3  ;;  %p213_p2 = scmp.ne.s32.totalorder %s134_s7, %s212_s1  ;;  %p218_p4 = scmp.lt.s32.totalorder %s212_s1, %s212_s1 }
  0x2a   :  { %162 = vmatpush3.bf16.msra.mxu0 %v159_v3 }
  0x2b   :  { %p219_p5 = por %p218_p4, %p217_p3 }
  0x2d   :  { %157 = vmatmul.mubr.msk.f32.vlgmr.msra.gmra.mrb[0].mxu0 %vm44_vm0, %v41_v4  ;;  %p220_p6 = pnand %p219_p5, %p213_p2 }
 0x100   :  { %v158_v5 = vpop.f32.mrb[0].mxu0 }
 0x101   :  { %127 = vst [vmem:[#allocation7 + $0x8] sm:$0xff] %v158_v5  ;;  %v117_v6 = vpop.f32.mrb[1].mxu0 }
 0x102   :  { %126 = vst [vmem:[#allocation7] sm:$0xff] %v117_v6 }
 0x103   :  { %223 = shalt.err (!%p220_p6)
}
 0x104   :  { %s224_s10 = scalar_lea.hbm %s307_s2, 256 }
 0x105   :  { %p225_p7 = scmp.ne.s32.totalorder %s307_s2, %s224_s10  ;;  %p228_p8 = scmp.lt.u32.totalorder %s224_s10, %s307_s2 }
 0x107   :  { %p230_p9 = pnand %p228_p8, %p225_p7 }
 0x109   :  { %233 = shalt.err (!%p230_p9)
}
 0x10a   :  { %139 = dma.vmem_to_hbm [thread:$0]  %s134_s7, 256, %s307_s2, [#allocation4], %s241_s19, %s241_s19, %s242_s20  }
 0x10b   :  { %238 = dma.done.wait [#allocation4], 256  }
 0x10c   :  { %239 = vsyncadd [#allocation4], 4294967040 }
 0x10d   :  { %143 = vsyncpa [#allocation3], 1 }
 0x10e   :  { %144 = vsyncpa [#allocation6], 1 }
 0x10f   :  { %145 = vsyncpa [#allocation4], 1 }

</bundles_post_ra>
